<compile_context>
chip_gen: v5e
topology: v5e:2x2
jax: 0.10.0
libtpu: 0.0.40
codegen_flags: <defaults>
</compile_context>

<pallas_src>
import jax
import jax.numpy as jnp
from jax.experimental import pallas as pl
from jax.experimental.pallas import tpu as pltpu


def drmm_kernel(x_ref, tv_ref, w1_ref, b1_ref, w2f_ref, b2_ref, gate_ref, out_ref):
    # x_ref:    (TB, Q*H)   bf16 batch-row tile, per-query histograms on lanes
    # tv_ref:   (TB, Q)     f32 term vectors, query positions on lanes
    # w1_ref:   (Q*H, Q*K1) bf16 kron(I_Q, W1^T)  (block-diagonal)
    # b1_ref:   (1, Q*K1)   f32 b1 tiled Q times
    # w2f_ref:  (Q*K1, Q)   f32 kron(I_Q, W2^T)   (2nd linear + per-query fold)
    # b2_ref:   (1, 1)      SMEM scalar
    # gate_ref: (1, 1)      SMEM scalar (termgating)
    # out_ref:  (1, 1, TB)  lane-dense per-batch scores
    q = tv_ref.shape[1]

    # First linear + tanh for all TB*Q (batch, query) pairs: one bf16 MXU
    # matmul with f32 accumulation; bias/tanh stay f32.
    h = jnp.tanh(
        jnp.dot(x_ref[...], w1_ref[...], preferred_element_type=jnp.float32)
        + b1_ref[...]
    )                                                            # (TB, Q*K1) f32

    # Second linear (output dim 1 per query) fused with the per-query fold:
    # one (TB, Q*K1) @ (Q*K1, Q) matmul instead of a degenerate (.,1) product.
    z = jnp.tanh(
        jnp.dot(h, w2f_ref[...], preferred_element_type=jnp.float32)
        + b2_ref[0, 0]
    )                                                            # (TB, Q) f32

    # Gating softmax over the Q lane axis for all TB rows at once.
    g_in = gate_ref[0, 0] * tv_ref[...]                          # (TB, Q)
    g_max = jnp.max(g_in, axis=1, keepdims=True)
    e = jnp.exp(g_in - g_max)
    denom = jnp.sum(e, axis=1, keepdims=True)
    g = e * pl.reciprocal(denom, approx=True)                    # (TB, Q)

    gz = g * z                                                   # (TB, Q)

    # Lane-dense scores: contract the Q axis of a (1, Q) ones row with the Q
    # axis of gz (q @ k^T dimension numbers) -> (1, TB); store the dense row
    # directly (no (8, TB) result pop + sublane slice).
    ones_row = jnp.ones((1, q), dtype=jnp.float32)
    s = jax.lax.dot_general(
        ones_row, gz, (((1,), (1,)), ((), ())),
        preferred_element_type=jnp.float32,
    )                                                            # (1, TB)
    out_ref[0] = s


def _round_up(x, m):
    return (x + m - 1) // m * m


def _choose_batch_tile(B, block_b):
    """Pad B to a multiple of 128 only, then pick the largest 128-multiple tile
    <= block_b that divides Bp (no wasted tile of junk reads).  Cap the tile so
    the grid has >= 2 steps when Bp >= 256 (both v7x TensorCores stay busy)."""
    Bp = _round_up(max(B, 1), 128)
    cap = max(128, (block_b // 128) * 128)
    if Bp >= 256:
        cap = min(cap, max(128, (Bp // 2) // 128 * 128))
    tb = 128
    t = 128
    while t <= cap:
        if Bp % t == 0:
            tb = t
        t += 128
    return tb, Bp


def prepare_drmm_params(params, query_term_maxlen, *, stream_dtype=jnp.bfloat16):
    """Fold the (small) query dimension into the lane axis of the weights ONCE
    (hoisted out of the per-call path) so the kernel is a pure 2-D matmul
    chain; the streamed first-layer weight is cast to the streaming dtype."""
    gate, w1, b1, w2, b2 = params
    Q = query_term_maxlen
    K1 = w1.shape[0]
    eye_q = jnp.eye(Q, dtype=jnp.float32)
    w1big = jnp.kron(eye_q, w1.T.astype(jnp.float32)).astype(stream_dtype)   # (Q*H, Q*K1)
    b1big = jnp.tile(b1.reshape(1, K1).astype(jnp.float32), (1, Q))          # (1, Q*K1)
    w2fold = jnp.kron(eye_q, w2.T.astype(jnp.float32))                       # (Q*K1, Q)
    b2s = b2.reshape(1, 1).astype(jnp.float32)
    gates = gate.reshape(1, 1).astype(jnp.float32)
    return (w1big, b1big, w2fold, b2s, gates)


def drmm_forward(prepared, interactions, termvector, *, block_b=1024,
                 stream_dtype=jnp.bfloat16):
    """interactions: (B, Q, H); termvector: (B, 1, Q) -> (B,) f32 scores."""
    w1big, b1big, w2fold, b2s, gates = prepared
    B, Q, H = interactions.shape
    QH = Q * H
    QK1 = w1big.shape[1]

    TB, Bp = _choose_batch_tile(B, block_b)
    nb = Bp // TB

    # Stream the dominant input in bf16 (halves HBM traffic, native MXU path);
    # accumulation inside the kernel stays f32.
    x = jnp.pad(interactions.reshape(B, QH).astype(stream_dtype),
                ((0, Bp - B), (0, 0)))                            # (Bp, Q*H)
    tv = jnp.pad(termvector.reshape(B, Q).astype(jnp.float32),
                 ((0, Bp - B), (0, 0)))                           # (Bp, Q)

    # Triple-buffer the one large streamed input when the grid is long enough.
    if nb >= 3:
        x_spec = pl.BlockSpec((TB, QH), lambda i: (i, 0),
                              pipeline_mode=pl.Buffered(3))
        x_bufs = 3
    else:
        x_spec = pl.BlockSpec((TB, QH), lambda i: (i, 0))
        x_bufs = 2

    # Explicit VMEM budget (v7x: 64 MiB physical / 32 MiB scoped default).
    elt = jnp.dtype(stream_dtype).itemsize
    vmem_bytes = (
        x_bufs * TB * QH * elt            # x pipeline buffers
        + 2 * TB * Q * 4                  # tv double buffer
        + 2 * QH * QK1 * elt              # w1big
        + 2 * QK1 * 4                     # b1big
        + 2 * QK1 * Q * 4                 # w2fold
        + 2 * TB * 4                      # output double buffer
        + 2 * TB * QK1 * 4                # h intermediate headroom
        + 8 * TB * Q * 4                  # z/g/gz headroom
    )
    vmem_limit = int(min(60 * 1024 * 1024, max(32 * 1024 * 1024, 2 * vmem_bytes)))

    out = pl.pallas_call(
        drmm_kernel,
        out_shape=jax.ShapeDtypeStruct((nb, 1, TB), jnp.float32),
        grid=(nb,),
        in_specs=[
            x_spec,                                               # interactions tile (bf16)
            pl.BlockSpec((TB, Q), lambda i: (i, 0)),              # term-vector tile
            pl.BlockSpec((QH, QK1), lambda i: (0, 0)),            # kron(I_Q, W1^T)
            pl.BlockSpec((1, QK1), lambda i: (0, 0)),             # tiled b1
            pl.BlockSpec((QK1, Q), lambda i: (0, 0)),             # kron(I_Q, W2^T)
            pl.BlockSpec(memory_space=pltpu.MemorySpace.SMEM),    # b2 scalar
            pl.BlockSpec(memory_space=pltpu.MemorySpace.SMEM),    # termgating scalar
        ],
        out_specs=pl.BlockSpec((1, 1, TB), lambda i: (i, 0, 0)),
        compiler_params=pltpu.CompilerParams(
            dimension_semantics=("parallel",),
            vmem_limit_bytes=vmem_limit),
    )(x, tv, w1big, b1big, w2fold, b2s, gates)
    return out.reshape(Bp)[:B]


def drmm_ref(params, interactions, termvector):
    gate, w1, b1, w2, b2 = params
    h = jnp.tanh(jnp.einsum("bqh,kh->bqk", interactions, w1) + b1)
    z = jnp.tanh(jnp.einsum("bqk,ok->bqo", h, w2) + b2)[..., 0]   # (B, Q)
    g = jax.nn.softmax(gate[0] * termvector[:, 0, :], axis=1)     # (B, Q)
    return jnp.sum(g * z, axis=1)                                 # (B,)


if __name__ == "__main__":
    Q, H = 8, 32                # query_term_maxlen, hist_size
    K1 = 20                     # hidden_sizes[0]

    key = jax.random.PRNGKey(0)
    ks = jax.random.split(key, 7)
    w1 = jax.random.normal(ks[0], (K1, H), jnp.float32) * 0.1     # Linear(hist_size, 20)
    b1 = jax.random.normal(ks[1], (K1,), jnp.float32) * 0.1
    w2 = jax.random.normal(ks[2], (1, K1), jnp.float32) * 0.1     # Linear(20, 1)
    b2 = jax.random.normal(ks[3], (1,), jnp.float32) * 0.1
    gate = jax.random.normal(ks[4], (1,), jnp.float32)            # termgating
    params = (gate, w1, b1, w2, b2)

    # Weight folding hoisted out of the per-call path (built once).
    prepared = prepare_drmm_params(params, Q)

    # Small batch (single grid step).
    B = 2
    interactions = jax.random.normal(ks[5], (B, Q, H), jnp.float32)
    termvector = jax.random.normal(ks[6], (B, 1, Q), jnp.float32)
    out = jax.block_until_ready(drmm_forward(prepared, interactions, termvector))
    ref = drmm_ref(params, interactions, termvector)
    assert out.shape == (B,), out.shape
    # bf16 streamed operands + approx reciprocal -> relaxed tolerance
    assert jnp.allclose(out, ref, atol=1e-2, rtol=1e-2), (out, ref)

    # Non-tile-aligned batch: exercises the minimal-padding policy, the
    # multi-step grid (nb >= 2) and the Buffered(3) input pipeline.
    B2 = 300
    inter2 = jax.random.normal(jax.random.PRNGKey(1), (B2, Q, H), jnp.float32)
    tv2 = jax.random.normal(jax.random.PRNGKey(2), (B2, 1, Q), jnp.float32)
    out2 = jax.block_until_ready(drmm_forward(prepared, inter2, tv2))
    ref2 = drmm_ref(params, inter2, tv2)
    assert out2.shape == (B2,), out2.shape
    assert jnp.allclose(out2, ref2, atol=1e-2, rtol=1e-2), (
        float(jnp.max(jnp.abs(out2 - ref2))))

    print("KERNEL_OK")
</pallas_src>

<mosaic_0001>
module attributes {stable_mosaic.version = 11 : i64} {
  func.func @drmm_kernel(%arg0: i32, %arg1: memref<128x256xbf16, #tpu.memory_space<vmem>>, %arg2: memref<128x8xf32, #tpu.memory_space<vmem>>, %arg3: memref<256x160xbf16, #tpu.memory_space<vmem>>, %arg4: memref<1x160xf32, #tpu.memory_space<vmem>>, %arg5: memref<160x8xf32, #tpu.memory_space<vmem>>, %arg6: memref<1x1xf32, #tpu.memory_space<smem>>, %arg7: memref<1x1xf32, #tpu.memory_space<smem>>, %arg8: memref<1x1x128xf32, #tpu.memory_space<vmem>>) attributes {dimension_semantics = [#tpu.dimension_semantics<parallel>], iteration_bounds = array<i64: 1>, scalar_prefetch = 0 : i64, scratch_operands = 0 : i64, tpu.core_type = #tpu.core_type<tc>, window_params = [{transform_indices = @transform_0, window_bounds = array<i64: 128, 256>}, {transform_indices = @transform_1, window_bounds = array<i64: 128, 8>}, {pipeline_mode = #tpu.pipeline_mode<synchronous>, transform_indices = @transform_2, window_bounds = array<i64: 256, 160>}, {pipeline_mode = #tpu.pipeline_mode<synchronous>, transform_indices = @transform_3, window_bounds = array<i64: 1, 160>}, {pipeline_mode = #tpu.pipeline_mode<synchronous>, transform_indices = @transform_4, window_bounds = array<i64: 160, 8>}, {transform_indices = @transform_5, window_bounds = array<i64: 1, 1>}, {transform_indices = @transform_6, window_bounds = array<i64: 1, 1>}, {transform_indices = @transform_7, window_bounds = array<i64: 1, 1, 128>}]} {
    %c0 = arith.constant 0 : index
    %c0_0 = arith.constant 0 : index
    %0 = vector.load %arg1[%c0, %c0_0] : memref<128x256xbf16, #tpu.memory_space<vmem>>, vector<128x256xbf16>
    %c0_1 = arith.constant 0 : index
    %c0_2 = arith.constant 0 : index
    %1 = vector.load %arg3[%c0_1, %c0_2] : memref<256x160xbf16, #tpu.memory_space<vmem>>, vector<256x160xbf16>
    %cst = arith.constant dense<0.000000e+00> : vector<128x160xf32>
    %2 = tpu.matmul %0, %1, %cst {dimension_numbers = #tpu.dot_dimension_numbers<[1], [0], [0], [1], [0, 0, 1, 1], [], []>} : vector<128x256xbf16>, vector<256x160xbf16>, vector<128x160xf32> -> vector<128x160xf32>
    %c0_3 = arith.constant 0 : index
    %c0_4 = arith.constant 0 : index
    %3 = vector.load %arg4[%c0_3, %c0_4] : memref<1x160xf32, #tpu.memory_space<vmem>>, vector<1x160xf32>
    %4 = vector.broadcast %3 : vector<1x160xf32> to vector<128x160xf32>
    %5 = arith.addf %2, %4 : vector<128x160xf32>
    %6 = math.tanh %5 : vector<128x160xf32>
    %c0_5 = arith.constant 0 : index
    %c0_6 = arith.constant 0 : index
    %7 = vector.load %arg5[%c0_5, %c0_6] : memref<160x8xf32, #tpu.memory_space<vmem>>, vector<160x8xf32>
    %cst_7 = arith.constant dense<0.000000e+00> : vector<128x8xf32>
    %8 = tpu.matmul %6, %7, %cst_7 {dimension_numbers = #tpu.dot_dimension_numbers<[1], [0], [0], [1], [0, 0, 1, 1], [], []>} : vector<128x160xf32>, vector<160x8xf32>, vector<128x8xf32> -> vector<128x8xf32>
    %c0_8 = arith.constant 0 : index
    %c0_9 = arith.constant 0 : index
    %9 = memref.load %arg6[%c0_8, %c0_9] : memref<1x1xf32, #tpu.memory_space<smem>>
    %10 = vector.broadcast %9 : f32 to vector<128x8xf32>
    %11 = arith.addf %8, %10 : vector<128x8xf32>
    %12 = math.tanh %11 : vector<128x8xf32>
    %c0_10 = arith.constant 0 : index
    %c0_11 = arith.constant 0 : index
    %13 = memref.load %arg7[%c0_10, %c0_11] : memref<1x1xf32, #tpu.memory_space<smem>>
    %c0_12 = arith.constant 0 : index
    %c0_13 = arith.constant 0 : index
    %14 = vector.load %arg2[%c0_12, %c0_13] : memref<128x8xf32, #tpu.memory_space<vmem>>, vector<128x8xf32>
    %15 = vector.broadcast %13 : f32 to vector<128x8xf32>
    %16 = arith.mulf %15, %14 : vector<128x8xf32>
    %cst_14 = arith.constant dense<0xFF800000> : vector<128xf32>
    %17 = vector.multi_reduction <maximumf>, %16, %cst_14 [1] : vector<128x8xf32> to vector<128xf32>
    %18 = vector.shape_cast %17 : vector<128xf32> to vector<128x1xf32>
    %19 = vector.broadcast %18 : vector<128x1xf32> to vector<128x8xf32>
    %20 = arith.subf %16, %19 : vector<128x8xf32>
    %21 = math.exp %20 : vector<128x8xf32>
    %cst_15 = arith.constant dense<0.000000e+00> : vector<128xf32>
    %22 = vector.multi_reduction <add>, %21, %cst_15 [1] : vector<128x8xf32> to vector<128xf32>
    %23 = vector.shape_cast %22 : vector<128xf32> to vector<128x1xf32>
    %24 = tpu.reciprocal %23 {approx = true} : vector<128x1xf32> -> vector<128x1xf32>
    %25 = vector.broadcast %24 : vector<128x1xf32> to vector<128x8xf32>
    %26 = arith.mulf %21, %25 : vector<128x8xf32>
    %27 = arith.mulf %26, %12 : vector<128x8xf32>
    %cst_16 = arith.constant 1.000000e+00 : f32
    %28 = vector.broadcast %cst_16 : f32 to vector<1x8xf32>
    %cst_17 = arith.constant dense<0.000000e+00> : vector<1x128xf32>
    %29 = tpu.matmul %28, %27, %cst_17 {dimension_numbers = #tpu.dot_dimension_numbers<[1], [1], [0], [0], [0, 0, 1, 0], [], []>} : vector<1x8xf32>, vector<128x8xf32>, vector<1x128xf32> -> vector<1x128xf32>
    %c0_18 = arith.constant 0 : index
    %c0_19 = arith.constant 0 : index
    %c0_20 = arith.constant 0 : index
    %30 = vector.load %arg8[%c0_18, %c0_19, %c0_20] : memref<1x1x128xf32, #tpu.memory_space<vmem>>, vector<1x1x128xf32>
    %31 = vector.shape_cast %30 : vector<1x1x128xf32> to vector<1x128xf32>
    %32 = vector.shape_cast %29 : vector<1x128xf32> to vector<1x1x128xf32>
    tpu.vector_store %arg8[%c0_18, %c0_19, %c0_20], %32 {strides = array<i32>} : memref<1x1x128xf32, #tpu.memory_space<vmem>>, vector<1x1x128xf32>,
    return
  }
  func.func @transform_0(%arg0: i32) -> (i32, i32) {
    %c0_i32 = arith.constant 0 : i32
    %c0_i32_0 = arith.constant 0 : i32
    return %arg0, %c0_i32 : i32, i32
  }
  func.func @transform_1(%arg0: i32) -> (i32, i32) {
    %c0_i32 = arith.constant 0 : i32
    %c0_i32_0 = arith.constant 0 : i32
    return %arg0, %c0_i32 : i32, i32
  }
  func.func @transform_2(%arg0: i32) -> (i32, i32) {
    %c0_i32 = arith.constant 0 : i32
    %c0_i32_0 = arith.constant 0 : i32
    %c0_i32_1 = arith.constant 0 : i32
    return %c0_i32, %c0_i32_0 : i32, i32
  }
  func.func @transform_3(%arg0: i32) -> (i32, i32) {
    %c0_i32 = arith.constant 0 : i32
    %c0_i32_0 = arith.constant 0 : i32
    %c0_i32_1 = arith.constant 0 : i32
    return %c0_i32, %c0_i32_0 : i32, i32
  }
  func.func @transform_4(%arg0: i32) -> (i32, i32) {
    %c0_i32 = arith.constant 0 : i32
    %c0_i32_0 = arith.constant 0 : i32
    %c0_i32_1 = arith.constant 0 : i32
    return %c0_i32, %c0_i32_0 : i32, i32
  }
  func.func @transform_5(%arg0: i32) -> (i32, i32) {
    %c0_i32 = arith.constant 0 : i32
    %c0_i32_0 = arith.constant 0 : i32
    %c0_i32_1 = arith.constant 0 : i32
    return %c0_i32, %c0_i32_0 : i32, i32
  }
  func.func @transform_6(%arg0: i32) -> (i32, i32) {
    %c0_i32 = arith.constant 0 : i32
    %c0_i32_0 = arith.constant 0 : i32
    %c0_i32_1 = arith.constant 0 : i32
    return %c0_i32, %c0_i32_0 : i32, i32
  }
  func.func @transform_7(%arg0: i32) -> (i32, i32, i32) {
    %c0_i32 = arith.constant 0 : i32
    %c0_i32_0 = arith.constant 0 : i32
    %c0_i32_1 = arith.constant 0 : i32
    return %arg0, %c0_i32, %c0_i32_0 : i32, i32, i32
  }
}

</mosaic_0001>

<bundles_post_ra>
// kernel: tpu_custom_call.1
= control target key start
LH: loop header
LB: loop body
LE: loop exit
PB: predicated region body
PF: predicated region fallthrough
CT: control target
= control target key end

     0   :  { %vm802_vm0 = vcmask 64512   ;;  %s2400_s0 = inlined_call_operand.vmem [shape: bf16[128,256], index: 0, kind: input, shape index: {}]   ;;  %s2401_s1 = inlined_call_operand.vmem [shape: f32[128,8], index: 1, kind: input, shape index: {}]   ;;  %s2402_s2 = inlined_call_operand.vmem [shape: bf16[256,160], index: 2, kind: input, shape index: {}]   ;;  %s2403_s3 = inlined_call_operand.vmem [shape: f32[1,160], index: 3, kind: input, shape index: {}]   ;;  %s2404_s4 = inlined_call_operand.vmem [shape: f32[160,8], index: 4, kind: input, shape index: {}]   ;;  %s2405_s5 = inlined_call_operand.<no memory space> [shape: f32[1,1], index: 5, kind: input, shape index: {}]   ;;  %s2406_s6 = inlined_call_operand.<no memory space> [shape: f32[1,1], index: 6, kind: input, shape index: {}]   ;;  %s2407_s7 = inlined_call_operand.hbm [shape: f32[1,1,128], index: 7, kind: output, shape index: {}]  }
   0x1   :  { %v1205_v0 = vld [vmem:[%s2402_s2 + $0x70] sm:$0xf]  ;;  %v1339_v1 = vld [vmem:[%s2402_s2 + $0x74] sm:$0xf0]  ;;  %v1622_v3 = vstv %s2406_s6  ;;  %v1197_v7 = vld [vmem:[%s2402_s2 + $0x60] sm:$0xf] }
   0x2   :  { %v1269_v2 = vld [vmem:[%s2402_s2 + $0xf0] sm:$0xf]  ;;  %v1206_v4 = vor.u32 %v1339_v1, %v1205_v0  ;;  %v1355_v5 = vld [vmem:[%s2402_s2 + $0xf4] sm:$0xf0]  ;;  %v1337_v10 = vld [vmem:[%s2402_s2 + $0x64] sm:$0xf0] }
   0x3   :  { %v784_v6 = vld [vmem:[%s2401_s1 + $0x78] sm:$0xff]  ;;  %v1270_v8 = vor.u32 %v1355_v5, %v1269_v2  ;;  %v1261_v11 = vld [vmem:[%s2402_s2 + $0xe0] sm:$0xf]  ;;  %v1353_v12 = vld [vmem:[%s2402_s2 + $0xe4] sm:$0xf0]  ;;  %v1198_v13 = vor.u32 %v1337_v10, %v1197_v7 }
   0x4   :  { %v1634_v9 = vmul.f32 %v1622_v3, %v784_v6  ;;  %323 = vmatpush.bf16.msra.mxu0 %v1206_v4  ;;  %v1262_v15 = vor.u32 %v1353_v12, %v1261_v11  ;;  %v1189_v16 = vld [vmem:[%s2402_s2 + $0x50] sm:$0xf]  ;;  %v1335_v17 = vld [vmem:[%s2402_s2 + $0x54] sm:$0xf0]  ;;  %v1181_v22 = vld [vmem:[%s2402_s2 + $0x40] sm:$0xf] }
   0x5   :  { %1356 = vmatpush.bf16.msra.mxu2 %v1270_v8  ;;  %372 = vmatpush.bf16.msra.mxu1 %v1270_v8  ;;  %v1253_v18 = vld [vmem:[%s2402_s2 + $0xd0] sm:$0xf]  ;;  %v1351_v19 = vld [vmem:[%s2402_s2 + $0xd4] sm:$0xf0]  ;;  %v1190_v20 = vor.u32 %v1335_v17, %v1189_v16  ;;  %v1333_v23 = vld [vmem:[%s2402_s2 + $0x44] sm:$0xf0] }
   0x6   :  { %v848_v14 = vsel %vm802_vm0, %v1634_v9, -inf  ;;  %v1254_v21 = vor.u32 %v1351_v19, %v1253_v18  ;;  %v1245_v24 = vld [vmem:[%s2402_s2 + $0xc0] sm:$0xf]  ;;  %v1349_v25 = vld [vmem:[%s2402_s2 + $0xc4] sm:$0xf0]  ;;  %v1182_v26 = vor.u32 %v1333_v23, %v1181_v22 }
   0x7   :  { %849 = vmax.xlane.f32.xlu0 %v848_v14  ;;  %v1246_v27 = vor.u32 %v1349_v25, %v1245_v24  ;;  %v1173_v28 = vld [vmem:[%s2402_s2 + $0x30] sm:$0xf]  ;;  %v1331_v29 = vld [vmem:[%s2402_s2 + $0x34] sm:$0xf0]  ;;  %v1354_v32 = vld [vmem:[%s2402_s2 + $0xf4] sm:$0xf] }
   0x8   :  { %324 = vmatpush.bf16.msra.mxu0 %v1198_v13  ;;  %v1237_v30 = vld [vmem:[%s2402_s2 + $0xb0] sm:$0xf]  ;;  %v1347_v31 = vld [vmem:[%s2402_s2 + $0xb4] sm:$0xf0]  ;;  %v1271_v33 = vld [vmem:[%s2402_s2 + $0xf8] sm:$0xf0]  ;;  %v1174_v37 = vor.u32 %v1331_v29, %v1173_v28 }
   0x9   :  { %1357 = vmatpush.bf16.msra.mxu2 %v1262_v15  ;;  %373 = vmatpush.bf16.msra.mxu1 %v1262_v15  ;;  %v1274_v34 = vor.u32 %v1354_v32, %v1271_v33  ;;  %v1352_v35 = vld [vmem:[%s2402_s2 + $0xe4] sm:$0xf]  ;;  %v1263_v36 = vld [vmem:[%s2402_s2 + $0xe8] sm:$0xf0] }
   0xc   :  { %325 = vmatpush.bf16.msra.mxu0 %v1190_v20 }
   0xd   :  { %1358 = vmatpush.bf16.msra.mxu2 %v1254_v21  ;;  %374 = vmatpush.bf16.msra.mxu1 %v1254_v21 }
  0x10   :  { %326 = vmatpush.bf16.msra.mxu0 %v1182_v26 }
  0x11   :  { %14 = vsyncpa [#allocation5], 0  ;;  %1359 = vmatpush.bf16.msra.mxu2 %v1246_v27  ;;  %375 = vmatpush.bf16.msra.mxu1 %v1246_v27  ;;  %v1238_v38 = vor.u32 %v1347_v31, %v1237_v30  ;;  %v1165_v39 = vld [vmem:[%s2402_s2 + $0x20] sm:$0xf]  ;;  %v1329_v40 = vld [vmem:[%s2402_s2 + $0x24] sm:$0xf0]  ;;  %v1266_v43 = vor.u32 %v1352_v35, %v1263_v36 }
  0x12   :  { %v1229_v41 = vld [vmem:[%s2402_s2 + $0xa0] sm:$0xf]  ;;  %v1345_v42 = vld [vmem:[%s2402_s2 + $0xa4] sm:$0xf0]  ;;  %470 = vmatpush.bf16.msra.mxu3 %v1274_v34  ;;  %v1166_v44 = vor.u32 %v1329_v40, %v1165_v39  ;;  %v1350_v45 = vld [vmem:[%s2402_s2 + $0xd4] sm:$0xf] }
  0x13   :  { %v1255_v46 = vld [vmem:[%s2402_s2 + $0xd8] sm:$0xf0]  ;;  %v1230_v47 = vor.u32 %v1345_v42, %v1229_v41  ;;  %v1157_v48 = vld [vmem:[%s2402_s2 + $0x10] sm:$0xf]  ;;  %v1327_v49 = vld [vmem:[%s2402_s2 + $0x14] sm:$0xf0] }
  0x14   :  { %327 = vmatpush.bf16.msra.mxu0 %v1174_v37  ;;  %v1221_v50 = vld [vmem:[%s2402_s2 + $0x90] sm:$0xf]  ;;  %v1343_v51 = vld [vmem:[%s2402_s2 + $0x94] sm:$0xf0]  ;;  %v1258_v52 = vor.u32 %v1350_v45, %v1255_v46  ;;  %v1348_v53 = vld [vmem:[%s2402_s2 + $0xc4] sm:$0xf]  ;;  %v1158_v55 = vor.u32 %v1327_v49, %v1157_v48 }
  0x15   :  { %1360 = vmatpush.bf16.msra.mxu2 %v1238_v38  ;;  %376 = vmatpush.bf16.msra.mxu1 %v1238_v38  ;;  %v1247_v54 = vld [vmem:[%s2402_s2 + $0xc8] sm:$0xf0]  ;;  %v1222_v56 = vor.u32 %v1343_v51, %v1221_v50  ;;  %v1149_v57 = vld [vmem:[%s2402_s2] sm:$0xf]  ;;  %v1325_v58 = vld [vmem:[%s2402_s2 + $0x4] sm:$0xf0] }
  0x16   :  { %471 = vmatpush.bf16.msra.mxu3 %v1266_v43  ;;  %v1213_v59 = vld [vmem:[%s2402_s2 + $0x80] sm:$0xf]  ;;  %v1341_v60 = vld [vmem:[%s2402_s2 + $0x84] sm:$0xf0]  ;;  %v1338_v61 = vld [vmem:[%s2402_s2 + $0x74] sm:$0xf]  ;;  %v1250_v62 = vor.u32 %v1348_v53, %v1247_v54  ;;  %v1150_v2 = vor.u32 %v1325_v58, %v1149_v57 }
  0x17   :  { %v1207_v63 = vld [vmem:[%s2402_s2 + $0x78] sm:$0xf0]  ;;  %v1346_v0 = vld [vmem:[%s2402_s2 + $0xb4] sm:$0xf]  ;;  %v1085_v4 = vld [vmem:[%s2400_s0] sm:$0xf]  ;;  %v1214_v7 = vor.u32 %v1341_v60, %v1213_v59 }
  0x18   :  { %328 = vmatpush.bf16.msra.mxu0 %v1166_v44  ;;  %v1239_v1 = vld [vmem:[%s2402_s2 + $0xb8] sm:$0xf0]  ;;  %v1309_v5 = vld [vmem:[%s2400_s0 + $0x4] sm:$0xf0]  ;;  %v1318_v6 = vld [vmem:[%s2400_s0 + $0x54] sm:$0xf]  ;;  %v1210_v12 = vor.u32 %v1338_v61, %v1207_v63 }
  0x19   :  { %1361 = vmatpush.bf16.msra.mxu2 %v1230_v47  ;;  %377 = vmatpush.bf16.msra.mxu1 %v1230_v47  ;;  %v1127_v8 = vld [vmem:[%s2400_s0 + $0x58] sm:$0xf0]  ;;  %v1308_v10 = vld [vmem:[%s2400_s0 + $0x4] sm:$0xf]  ;;  %v1087_v11 = vld [vmem:[%s2400_s0 + $0x8] sm:$0xf0]  ;;  %v1242_v14 = vor.u32 %v1346_v0, %v1239_v1  ;;  %v1776_v15 = vor.u32 %v1309_v5, %v1085_v4 }
  0x1a   :  { %472 = vmatpush.bf16.msra.mxu3 %v1258_v52  ;;  %v1336_v13 = vld [vmem:[%s2402_s2 + $0x64] sm:$0xf]  ;;  %v1199_v16 = vld [vmem:[%s2402_s2 + $0x68] sm:$0xf0]  ;;  %v1787_v19 = vor.u32 %v1318_v6, %v1127_v8  ;;  %v1090_v20 = vor.u32 %v1308_v10, %v1087_v11  ;;  %v1334_v23 = vld [vmem:[%s2402_s2 + $0x54] sm:$0xf] }
  0x1b   :  { %v1344_v17 = vld [vmem:[%s2402_s2 + $0xa4] sm:$0xf]  ;;  %v1231_v18 = vld [vmem:[%s2402_s2 + $0xa8] sm:$0xf0]  ;;  %v1202_v21 = vor.u32 %v1336_v13, %v1199_v16  ;;  %v1191_v24 = vld [vmem:[%s2402_s2 + $0x58] sm:$0xf0] }
  0x1c   :  { %329 = vmatpush.bf16.msra.mxu0 %v1158_v55  ;;  %v1234_v22 = vor.u32 %v1344_v17, %v1231_v18  ;;  %v1342_v25 = vld [vmem:[%s2402_s2 + $0x94] sm:$0xf]  ;;  %v1223_v26 = vld [vmem:[%s2402_s2 + $0x98] sm:$0xf0]  ;;  %v1194_v27 = vor.u32 %v1334_v23, %v1191_v24  ;;  %v1332_v28 = vld [vmem:[%s2402_s2 + $0x44] sm:$0xf] }
  0x1d   :  { %1362 = vmatpush.bf16.msra.mxu2 %v1222_v56  ;;  %378 = vmatpush.bf16.msra.mxu1 %v1222_v56  ;;  %v1226_v29 = vor.u32 %v1342_v25, %v1223_v26  ;;  %v1183_v30 = vld [vmem:[%s2402_s2 + $0x48] sm:$0xf0]  ;;  %v1340_v31 = vld [vmem:[%s2402_s2 + $0x84] sm:$0xf]  ;;  %v1330_v35 = vld [vmem:[%s2402_s2 + $0x34] sm:$0xf] }
  0x1e   :  { %473 = vmatpush.bf16.msra.mxu3 %v1250_v62  ;;  %v1215_v32 = vld [vmem:[%s2402_s2 + $0x88] sm:$0xf0]  ;;  %v1186_v33 = vor.u32 %v1332_v28, %v1183_v30  ;;  %v1175_v36 = vld [vmem:[%s2402_s2 + $0x38] sm:$0xf0]  ;;  %v1093_v37 = vld [vmem:[%s2400_s0 + $0x10] sm:$0xf] }
  0x1f   :  { %v1218_v34 = vor.u32 %v1340_v31, %v1215_v32  ;;  %v1311_v38 = vld [vmem:[%s2400_s0 + $0x14] sm:$0xf0]  ;;  %v1320_v39 = vld [vmem:[%s2400_s0 + $0x64] sm:$0xf]  ;;  %v1135_v40 = vld [vmem:[%s2400_s0 + $0x68] sm:$0xf0]  ;;  %v1178_v43 = vor.u32 %v1330_v35, %v1175_v36 }
  0x20   :  { %330 = vmatpush.bf16.msra.mxu0 %v1150_v2  ;;  %v1310_v41 = vld [vmem:[%s2400_s0 + $0x14] sm:$0xf]  ;;  %v1095_v42 = vld [vmem:[%s2400_s0 + $0x18] sm:$0xf0]  ;;  %v1839_v44 = vor.u32 %v1311_v38, %v1093_v37  ;;  %v1328_v45 = vld [vmem:[%s2402_s2 + $0x24] sm:$0xf]  ;;  %v1847_v47 = vor.u32 %v1320_v39, %v1135_v40 }
  0x21   :  { %1363 = vmatpush.bf16.msra.mxu2 %v1214_v7  ;;  %379 = vmatpush.bf16.msra.mxu1 %v1214_v7  ;;  %v1167_v46 = vld [vmem:[%s2402_s2 + $0x28] sm:$0xf0]  ;;  %v1098_v48 = vor.u32 %v1310_v41, %v1095_v42  ;;  %v783_v49 = vld [vmem:[%s2401_s1 + $0x70] sm:$0xff]  ;;  %v780_v51 = vld [vmem:[%s2401_s1 + $0x58] sm:$0xff]  ;;  %vm573_vm1 = vcmask 261120   ;;  %s1074_s22 = sshll.u32 %s2407_s7, 4  ;;  %s1075_s22 = int_to_ptr.hbm [resolvable:$true] %s1074_s22 }
  0x22   :  { %474 = vmatpush.bf16.msra.mxu3 %v1242_v14  ;;  %v782_v50 = vld [vmem:[%s2401_s1 + $0x68] sm:$0xff]  ;;  %v1170_v52 = vor.u32 %v1328_v45, %v1167_v46  ;;  %v1859_v53 = vmul.f32 %v1622_v3, %v783_v49  ;;  %v1865_v55 = vmul.f32 %v1622_v3, %v780_v51  ;;  %v1326_v56 = vld [vmem:[%s2402_s2 + $0x14] sm:$0xf]  ;;  %v1159_v57 = vld [vmem:[%s2402_s2 + $0x18] sm:$0xf0] }
  0x23   :  { %331 = vmatmul.bf16.vlgmr.msra.gmra.mxu0 %v1776_v15  ;;  %v1862_v54 = vmul.f32 %v1622_v3, %v782_v50  ;;  %v779_v61 = vld [vmem:[%s2401_s1 + $0x50] sm:$0xff]  ;;  %v778_v62 = vld [vmem:[%s2401_s1 + $0x48] sm:$0xff]  ;;  %v1162_v63 = vor.u32 %v1326_v56, %v1159_v57  ;;  %v1324_v1 = vld [vmem:[%s2402_s2 + $0x4] sm:$0xf] }
  0x24   :  { %405 = vmatmul.bf16.vlgmr.msra.gmra.mxu2 %v1787_v19  ;;  %380 = vmatmul.bf16.vlgmr.msra.gmra.mxu1 %v1090_v20  ;;  %v845_v58 = vsel %vm802_vm0, %v1859_v53, -inf  ;;  %v836_v60 = vsel %vm802_vm0, %v1865_v55, -inf  ;;  %v1888_v0 = vmul.f32 %v1622_v3, %v778_v62  ;;  %v1151_v2 = vld [vmem:[%s2402_s2 + $0x8] sm:$0xf0]  ;;  %v1897_v4 = vmul.f32 %v1622_v3, %v779_v61  ;;  %v1101_v8 = vld [vmem:[%s2400_s0 + $0x20] sm:$0xf] }
  0x25   :  { %421 = vmatpush.bf16.msrb.mxu2 %v1210_v12  ;;  %v842_v59 = vsel %vm802_vm0, %v1862_v54, -inf  ;;  %846 = vmax.xlane.f32.xlu0 %v845_v58  ;;  %v1154_v5 = vor.u32 %v1324_v1, %v1151_v2  ;;  %v1313_v10 = vld [vmem:[%s2400_s0 + $0x24] sm:$0xf0]  ;;  %v1322_v11 = vld [vmem:[%s2400_s0 + $0x74] sm:$0xf]  ;;  %v773_v30 = vld [vmem:[%s2401_s1 + $0x20] sm:$0xff] }
  0x26   :  { %475 = vmatpush.bf16.msra.mxu3 %v1234_v22  ;;  %843 = vmax.xlane.f32.xlu1 %v842_v59  ;;  %v830_v6 = vsel %vm802_vm0, %v1888_v0, -inf  ;;  %v833_v7 = vsel %vm802_vm0, %v1897_v4, -inf  ;;  %v1143_v12 = vld [vmem:[%s2400_s0 + $0x78] sm:$0xf0]  ;;  %v1312_v13 = vld [vmem:[%s2400_s0 + $0x24] sm:$0xf]  ;;  %v1921_v16 = vor.u32 %v1313_v10, %v1101_v8 }
  0x27   :  { %837 = vmax.xlane.f32.xlu2 %v836_v60  ;;  %v1103_v14 = vld [vmem:[%s2400_s0 + $0x28] sm:$0xf0]  ;;  %v1923_v17 = vor.u32 %v1322_v11, %v1143_v12  ;;  %v775_v22 = vld [vmem:[%s2401_s1 + $0x30] sm:$0xff]  ;;  %v772_v31 = vld [vmem:[%s2401_s1 + $0x18] sm:$0xff] }
  0x28   :  { %v1106_v18 = vor.u32 %v1312_v13, %v1103_v14  ;;  %v1941_v25 = vmul.f32 %v1622_v3, %v775_v22  ;;  %v1109_v38 = vld [vmem:[%s2400_s0 + $0x30] sm:$0xf]  ;;  %v1315_v39 = vld [vmem:[%s2400_s0 + $0x34] sm:$0xf0]  ;;  %v1314_v40 = vld [vmem:[%s2400_s0 + $0x34] sm:$0xf] }
  0x29   :  { %422 = vmatpush.bf16.msrb.mxu2 %v1202_v21  ;;  %v776_v21 = vld [vmem:[%s2401_s1 + $0x38] sm:$0xff]  ;;  %v1110_v42 = vor.u32 %v1315_v39, %v1109_v38  ;;  %v774_v45 = vld [vmem:[%s2401_s1 + $0x28] sm:$0xff]  ;;  %v1316_v59 = vld [vmem:[%s2400_s0 + $0x44] sm:$0xf] }
  0x2a   :  { %476 = vmatpush.bf16.msra.mxu3 %v1226_v29  ;;  %v1938_v24 = vmul.f32 %v1622_v3, %v776_v21  ;;  %v821_v28 = vsel %vm802_vm0, %v1941_v25, -inf  ;;  %v777_v29 = vld [vmem:[%s2401_s1 + $0x40] sm:$0xff]  ;;  %v1111_v41 = vld [vmem:[%s2400_s0 + $0x38] sm:$0xf0]  ;;  %v770_v46 = vld [vmem:[%s2401_s1 + $0x8] sm:$0xff] }
  0x2b   :  { %v1961_v32 = vmul.f32 %v1622_v3, %v777_v29  ;;  %v1997_v49 = vmul.f32 %v1622_v3, %v770_v46  ;;  %v1317_v57 = vld [vmem:[%s2400_s0 + $0x44] sm:$0xf0]  ;;  %v1119_v60 = vld [vmem:[%s2400_s0 + $0x48] sm:$0xf0]  ;;  %v1319_v1 = vld [vmem:[%s2400_s0 + $0x54] sm:$0xf0] }
  0x2c   :  { %v1122_v62 = vor.u32 %v1316_v59, %v1119_v60  ;;  %v1321_v8 = vld [vmem:[%s2400_s0 + $0x64] sm:$0xf0]  ;;  %v2080_v22 = vld [vmem:[%s2403_s3] sm:$0x3]  ;;  %v557_v38 = vld [vmem:[%s2404_s4 + $0x30] sm:$0xff] }
  0x2d   :  { %423 = vmatpush.bf16.msrb.mxu2 %v1194_v27  ;;  %831 = vmax.xlane.f32.xlu0 %v830_v6  ;;  %v824_v27 = vsel %vm802_vm0, %v1938_v24, -inf  ;;  %v827_v35 = vsel %vm802_vm0, %v1961_v32, -inf  ;;  %v806_v51 = vsel %vm802_vm0, %v1997_v49, -inf  ;;  %v564_v21 = vld [vmem:[%s2404_s4 + $0x68] sm:$0xff]  ;;  %v555_v46 = vld [vmem:[%s2404_s4 + $0x20] sm:$0xff] }
  0x2e   :  { %477 = vmatpush.bf16.msra.mxu3 %v1218_v34  ;;  %v1967_v34 = vmul.f32 %v1622_v3, %v773_v30  ;;  %v560_v29 = vld [vmem:[%s2404_s4 + $0x48] sm:$0xff] }
  0x2f   :  { %834 = vmax.xlane.f32.xlu2 %v833_v7 }
  0x30   :  { %v815_v37 = vsel %vm802_vm0, %v1967_v34, -inf }
  0x31   :  { %424 = vmatpush.bf16.msrb.mxu2 %v1186_v33  ;;  %478 = vmatmul.bf16.vlgmr.msra.gmra.mxu3 %v1090_v20  ;;  %v781_v20 = vld [vmem:[%s2401_s1 + $0x60] sm:$0xff]  ;;  %v1964_v33 = vmul.f32 %v1622_v3, %v772_v31 }
  0x32   :  { %v1935_v23 = vmul.f32 %v1622_v3, %v781_v20  ;;  %v565_v20 = vld [vmem:[%s2404_s4 + $0x70] sm:$0xff] }
  0x33   :  { %336 = vmatmul.bf16.gmra.mxu0 %v1839_v44  ;;  %v812_v36 = vsel %vm802_vm0, %v1964_v33, -inf }
  0x34   :  { %410 = vmatmul.bf16.gmra.mxu2 %v1847_v47  ;;  %385 = vmatmul.bf16.gmra.mxu1 %v1098_v48  ;;  %v839_v26 = vsel %vm802_vm0, %v1935_v23, -inf }
  0x35   :  { %425 = vmatpush.bf16.msrb.mxu2 %v1178_v43  ;;  %840 = vmax.xlane.f32.xlu1 %v839_v26  ;;  %v1114_v43 = vor.u32 %v1314_v40, %v1111_v41  ;;  %v562_v26 = vld [vmem:[%s2404_s4 + $0x58] sm:$0xff]  ;;  %v556_v40 = vld [vmem:[%s2404_s4 + $0x28] sm:$0xff] }
  0x36   :  { %822 = vmax.xlane.f32.xlu0 %v821_v28  ;;  %v2089_v28 = vperm.slane %v2080_v22, 0 }
  0x37   :  { %825 = vmax.xlane.f32.xlu2 %v824_v27  ;;  %v561_v27 = vld [vmem:[%s2404_s4 + $0x50] sm:$0xff] }
  0x39   :  { %426 = vmatpush.bf16.msrb.mxu2 %v1170_v52  ;;  %v771_v52 = vld [vmem:[%s2401_s1 + $0x10] sm:$0xff] }
  0x3a   :  { %v2008_v56 = vmul.f32 %v1622_v3, %v771_v52 }
  0x3c   :  { %v809_v58 = vsel %vm802_vm0, %v2008_v56, -inf }
  0x3d   :  { %427 = vmatpush.bf16.msrb.mxu2 %v1162_v63  ;;  %828 = vmax.xlane.f32.xlu1 %v827_v35  ;;  %v1125_v63 = vld [vmem:[%s2400_s0 + $0x50] sm:$0xf]  ;;  %v559_v35 = vld [vmem:[%s2404_s4 + $0x40] sm:$0xff] }
  0x3e   :  { %813 = vmax.xlane.f32.xlu0 %v812_v36  ;;  %v1126_v2 = vor.u32 %v1319_v1, %v1125_v63 }
  0x3f   :  { %816 = vmax.xlane.f32.xlu2 %v815_v37  ;;  %v558_v37 = vld [vmem:[%s2404_s4 + $0x38] sm:$0xff] }
  0x41   :  { %428 = vmatpush.bf16.msrb.mxu2 %v1154_v5  ;;  %483 = vmatmul.bf16.gmra.mxu3 %v1098_v48  ;;  %v1994_v48 = vmul.f32 %v1622_v3, %v774_v45 }
  0x43   :  { %341 = vmatmul.bf16.gmra.mxu0 %v1921_v16  ;;  %v818_v50 = vsel %vm802_vm0, %v1994_v48, -inf }
  0x44   :  { %415 = vmatmul.bf16.gmra.mxu2 %v1923_v17  ;;  %390 = vmatmul.bf16.gmra.mxu1 %v1106_v18 }
  0x45   :  { %819 = vmax.xlane.f32.xlu1 %v818_v50 }
  0x46   :  { %807 = vmax.xlane.f32.xlu0 %v806_v51 }
  0x4d   :  { %810 = vmax.xlane.f32.xlu1 %v809_v58  ;;  %v553_v58 = vld [vmem:[%s2404_s4 + $0x10] sm:$0xff] }
  0x51   :  { %488 = vmatmul.bf16.gmra.mxu3 %v1106_v18 }
  0x53   :  { %346 = vmatmul.bf16.gmra.mxu0 %v1110_v42 }
  0x54   :  { %429 = vmatmul.bf16.vlgmr.msrb.gmra.mxu2 %v1776_v15  ;;  %395 = vmatmul.bf16.gmra.mxu1 %v1114_v43  ;;  %v1117_v15 = vld [vmem:[%s2400_s0 + $0x40] sm:$0xf] }
  0x55   :  { %v1118_v61 = vor.u32 %v1317_v57, %v1117_v15  ;;  %v554_v15 = vld [vmem:[%s2404_s4 + $0x18] sm:$0xff] }
  0x61   :  { %493 = vmatmul.bf16.gmra.mxu3 %v1114_v43 }
  0x63   :  { %351 = vmatmul.bf16.gmra.mxu0 %v1118_v61 }
  0x64   :  { %434 = vmatmul.bf16.gmra.mxu2 %v1839_v44  ;;  %400 = vmatmul.bf16.gmra.mxu1 %v1122_v62  ;;  %v1133_v44 = vld [vmem:[%s2400_s0 + $0x60] sm:$0xf] }
  0x65   :  { %v2039_v10 = vor.u32 %v1321_v8, %v1133_v44 }
  0x71   :  { %498 = vmatmul.bf16.gmra.mxu3 %v1122_v62 }
  0x73   :  { %356 = vmatmul.bf16.gmra.mxu0 %v1126_v2 }
  0x74   :  { %439 = vmatmul.bf16.gmra.mxu2 %v1921_v16  ;;  %v1323_v16 = vld [vmem:[%s2400_s0 + $0x74] sm:$0xf0] }
  0x7a   :  { %v850_v5 = vpop.xlane.xlu0 %849 }
  0x7b   :  { %v866_v6 = vsub.f32 %v1634_v9, %v850_v5  ;;  %v769_v9 = vld [vmem:[%s2401_s1] sm:$0xff] }
  0x7c   :  { %v2051_v13 = vmul.f32 %v1622_v3, %v769_v9  ;;  %v566_v3 = vld [vmem:[%s2404_s4 + $0x78] sm:$0xff]  ;;  %v551_v5 = vld [vmem:[%s2404_s4] sm:$0xff] }
  0x7d   :  { %v897_v7 = vmul.f32 1.442695, %v866_v6  ;;  %622 = vmatpush.msrb.mxu0 %v566_v3  ;;  %1364 = vmatpush.msrb.mxu3 %v566_v3 }
  0x7e   :  { %v803_v14 = vsel %vm802_vm0, %v2051_v13, -inf }
  0x7f   :  { %1382 = vpow2.f32 %v897_v7  ;;  %623 = vmatpush.msrb.mxu0 %v565_v20  ;;  %1365 = vmatpush.msrb.mxu3 %v565_v20 }
  0x81   :  { %503 = vmatmul.bf16.gmra.mxu3 %v1787_v19  ;;  %v1141_v19 = vld [vmem:[%s2400_s0 + $0x70] sm:$0xf]  ;;  %624 = vmatpush.msrb.mxu0 %v564_v21 }
  0x82   :  { %v2061_v18 = vor.u32 %v1323_v16, %v1141_v19  ;;  %1366 = vmatpush.msrb.mxu3 %v564_v21 }
  0x83   :  { %361 = vmatmul.bf16.gmra.mxu0 %v2039_v10 }
  0x84   :  { %444 = vmatmul.bf16.gmra.mxu2 %v1110_v42 }
  0x85   :  { %v2043_v11 = vpop.eup %1382 }
  0x86   :  { %v944_v12 = vsel %vm802_vm0, %v2043_v11, 0.0 }
  0x87   :  { %945 = vadd.xlane.f32.xlu2 %v944_v12 }
  0x8f   :  { %804 = vmax.xlane.f32.xlu2 %v803_v14  ;;  %v570_v14 = vld [vmem:[%s2404_s4 + $0x98] sm:$0xff] }
  0x90   :  { %699 = vmatpush.msrb.mxu1 %v570_v14 }
  0x91   :  { %508 = vmatmul.bf16.gmra.mxu3 %v1847_v47  ;;  %v563_v47 = vld [vmem:[%s2404_s4 + $0x60] sm:$0xff] }
  0x92   :  { %625 = vmatpush.msrb.mxu0 %v563_v47  ;;  %1367 = vmatpush.msrb.mxu3 %v563_v47 }
  0x93   :  { %366 = vmatmul.bf16.gmra.mxu0 %v2061_v18 }
  0x94   :  { %449 = vmatmul.bf16.gmra.mxu2 %v1118_v61  ;;  %626 = vmatpush.msrb.mxu0 %v562_v26 }
  0x95   :  { %1368 = vmatpush.msrb.mxu3 %v562_v26 }
  0x96   :  { %627 = vmatpush.msrb.mxu0 %v561_v27 }
  0x97   :  { %1369 = vmatpush.msrb.mxu3 %v561_v27 }
  0x98   :  { %628 = vmatpush.msrb.mxu0 %v560_v29  ;;  %v847_v42 = vpop.xlane.xlu0 %846 }
  0x99   :  { %1370 = vmatpush.msrb.mxu3 %v560_v29  ;;  %v844_v45 = vpop.xlane.xlu1 %843 }
  0x9a   :  { %629 = vmatpush.msrb.mxu0 %v559_v35  ;;  %v864_v51 = vsub.f32 %v1862_v54, %v844_v45  ;;  %v838_v52 = vpop.xlane.xlu2 %837  ;;  %v552_v54 = vld [vmem:[%s2404_s4 + $0x8] sm:$0xff] }
  0x9b   :  { %1371 = vmatpush.msrb.mxu3 %v559_v35  ;;  %v862_v44 = vsub.f32 %v1865_v55, %v838_v52 }
  0x9c   :  { %630 = vmatpush.msrb.mxu0 %v558_v37  ;;  %v893_v57 = vmul.f32 1.442695, %v864_v51 }
  0x9d   :  { %1372 = vmatpush.msrb.mxu3 %v558_v37  ;;  %v569_v37 = vld [vmem:[%s2404_s4 + $0x90] sm:$0xff] }
  0x9e   :  { %631 = vmatpush.msrb.mxu0 %v557_v38  ;;  %700 = vmatpush.msrb.mxu1 %v569_v37 }
  0x9f   :  { %1373 = vmatpush.msrb.mxu3 %v557_v38 }
  0xa0   :  { %v332_v30 = vpop.f32.mrf.mxu0  ;;  %632 = vmatpush.msrb.mxu0 %v556_v40  ;;  %v2126_v63 = vpop.xlane.xlu0 %831 }
  0xa1   :  { %v381_v31 = vpop.f32.mrf.mxu1  ;;  %513 = vmatmul.bf16.gmra.mxu3 %v1923_v17  ;;  %v333_v36 = vadd.f32 %v332_v30, %v2089_v28 }
  0xa2   :  { %633 = vmatpush.msrb.mxu0 %v555_v46  ;;  %1374 = vmatpush.msrb.mxu3 %v556_v40  ;;  %v835_v7 = vpop.xlane.xlu2 %834 }
  0xa3   :  { %v382_v17 = vadd.f32 %v381_v31, %v333_v36  ;;  %v861_v8 = vsub.f32 %v1897_v4, %v835_v7  ;;  %v889_v4 = vmul.f32 1.442695, %v862_v44 }
  0xa4   :  { %454 = vmatmul.bf16.gmra.mxu2 %v1126_v2  ;;  %634 = vmatpush.msrb.mxu0 %v554_v15  ;;  %v865_v2 = vsub.f32 %v1859_v53, %v847_v42 }
  0xa5   :  { %1384 = vtanh.f32 %v382_v17  ;;  %1375 = vmatpush.msrb.mxu3 %v555_v46  ;;  %v887_v12 = vmul.f32 1.442695, %v861_v8 }
  0xa6   :  { %635 = vmatpush.msrb.mxu0 %v553_v58  ;;  %1386 = vpow2.f32 %v893_v57  ;;  %v895_v53 = vmul.f32 1.442695, %v865_v2 }
  0xa7   :  { %v2105_v39 = vpop.f32.mrf.mxu2  ;;  %1376 = vmatpush.msrb.mxu3 %v554_v15  ;;  %v567_v15 = vld [vmem:[%s2404_s4 + $0x80] sm:$0xff] }
  0xa8   :  { %v334_v41 = vpop.f32.mrf.mxu0  ;;  %636 = vmatpush.msrb.mxu0 %v552_v54  ;;  %v841_v20 = vpop.xlane.xlu1 %840 }
  0xa9   :  { %v383_v43 = vpop.f32.mrf.mxu1  ;;  %v335_v50 = vadd.f32 %v334_v41, %v2089_v28  ;;  %1377 = vmatpush.msrb.mxu3 %v553_v58  ;;  %v2145_v47 = vpop.xlane.xlu0 %822  ;;  %v863_v31 = vsub.f32 %v1935_v23, %v841_v20  ;;  %v568_v23 = vld [vmem:[%s2404_s4 + $0x88] sm:$0xff] }
  0xaa   :  { %637 = vmatpush.msrb.mxu0 %v551_v5  ;;  %v826_v27 = vpop.xlane.xlu2 %825  ;;  %701 = vmatpush.msrb.mxu1 %v568_v23 }
  0xab   :  { %v384_v59 = vadd.f32 %v383_v43, %v335_v50  ;;  %v1385_v61 = vpop.eup %1384  ;;  %1378 = vmatpush.msrb.mxu3 %v552_v54  ;;  %v858_v30 = vsub.f32 %v1938_v24, %v826_v27  ;;  %v891_v24 = vmul.f32 1.442695, %v863_v31 }
  0xac   :  { %638 = vmatmul.f32.vlgmr.msrb.gmra.mxu0 %v1385_v61  ;;  %v2136_v9 = vpop.eup %1386  ;;  %702 = vmatpush.msrb.mxu1 %v567_v15 }
  0xad   :  { %1388 = vtanh.f32 %v384_v59  ;;  %1379 = vmatpush.msrb.mxu3 %v551_v5  ;;  %v938_v55 = vsel %vm802_vm0, %v2136_v9, 0.0  ;;  %v881_v36 = vmul.f32 1.442695, %v858_v30  ;;  %v860_v59 = vsub.f32 %v1888_v0, %v2126_v63 }
  0xae   :  { %1390 = vpow2.f32 %v887_v12  ;;  %939 = vadd.xlane.f32.xlu0 %v938_v55 }
  0xaf   :  { %v2121_v60 = vpop.f32.mrf.mxu2  ;;  %1392 = vpow2.f32 %v895_v53 }
  0xb0   :  { %v337_v62 = vpop.f32.mrf.mxu0  ;;  %v829_v45 = vpop.xlane.xlu1 %828 }
  0xb1   :  { %v386_v1 = vpop.f32.mrf.mxu1  ;;  %v338_v6 = vadd.f32 %v337_v62, %v2089_v28  ;;  %v859_v51 = vsub.f32 %v1961_v32, %v829_v45  ;;  %v2169_v52 = vpop.xlane.xlu0 %813 }
  0xb2   :  { %v817_v58 = vpop.xlane.xlu2 %816 }
  0xb3   :  { %v387_v19 = vadd.f32 %v386_v1, %v338_v6  ;;  %v883_v54 = vmul.f32 1.442695, %v859_v51  ;;  %v855_v61 = vsub.f32 %v1967_v34, %v817_v58 }
  0xb4   :  { %459 = vmatmul.bf16.gmra.mxu2 %v2039_v10  ;;  %v1389_v10 = vpop.eup %1388  ;;  %v2148_v29 = vpop.f32.mrf.mxu3 }
  0xb5   :  { %1394 = vtanh.f32 %v387_v19  ;;  %641 = vmatmul.f32.gmra.mxu0 %v1389_v10  ;;  %v2152_v35 = vpop.eup %1390  ;;  %v875_v5 = vmul.f32 1.442695, %v855_v61 }
  0xb6   :  { %1396 = vpow2.f32 %v889_v4  ;;  %v929_v17 = vsel %vm802_vm0, %v2152_v35, 0.0  ;;  %v2159_v40 = vpop.eup %1392  ;;  %v857_v4 = vsub.f32 %v1941_v25, %v2145_v47 }
  0xb7   :  { %v2143_v16 = vpop.f32.mrf.mxu2  ;;  %1398 = vpow2.f32 %v881_v36  ;;  %930 = vadd.xlane.f32.xlu0 %v929_v17  ;;  %v941_v32 = vsel %vm802_vm0, %v2159_v40, 0.0 }
  0xb8   :  { %v339_v3 = vpop.f32.mrf.mxu0  ;;  %942 = vadd.xlane.f32.xlu1 %v941_v32  ;;  %v820_v44 = vpop.xlane.xlu1 %819  ;;  %v879_v47 = vmul.f32 1.442695, %v857_v4 }
  0xb9   :  { %v388_v21 = vpop.f32.mrf.mxu1  ;;  %v340_v26 = vadd.f32 %v339_v3, %v2089_v28  ;;  %v856_v12 = vsub.f32 %v1994_v48, %v820_v44  ;;  %v808_v14 = vpop.xlane.xlu0 %807 }
  0xba   :  { %v852_v55 = vsub.f32 %v1997_v49, %v808_v14 }
  0xbb   :  { %v389_v38 = vadd.f32 %v388_v21, %v340_v26  ;;  %v1395_v42 = vpop.eup %1394  ;;  %v877_v10 = vmul.f32 1.442695, %v856_v12 }
  0xbc   :  { %v2166_v46 = vpop.eup %1396  ;;  %v2185_v2 = vpop.f32.mrf.mxu3  ;;  %v869_v20 = vmul.f32 1.442695, %v852_v55 }
  0xbd   :  { %1400 = vtanh.f32 %v389_v38  ;;  %644 = vmatmul.f32.gmra.mxu0 %v1395_v42  ;;  %v932_v62 = vsel %vm802_vm0, %v2166_v46, 0.0  ;;  %v2183_v1 = vpop.eup %1398  ;;  %v854_v42 = vsub.f32 %v1964_v33, %v2169_v52 }
  0xbe   :  { %1402 = vpow2.f32 %v891_v24  ;;  %933 = vadd.xlane.f32.xlu2 %v932_v62  ;;  %v920_v34 = vsel %vm802_vm0, %v2183_v1, 0.0 }
  0xbf   :  { %v2161_v41 = vpop.f32.mrf.mxu2  ;;  %1404 = vpow2.f32 %v883_v54  ;;  %921 = vadd.xlane.f32.xlu0 %v920_v34  ;;  %v873_v58 = vmul.f32 1.442695, %v854_v42 }
  0xc0   :  { %v342_v43 = vpop.f32.mrf.mxu0  ;;  %1406 = vpow2.f32 %v875_v5  ;;  %v811_v37 = vpop.xlane.xlu1 %810 }
  0xc1   :  { %v391_v50 = vpop.f32.mrf.mxu1  ;;  %v343_v57 = vadd.f32 %v342_v43, %v2089_v28  ;;  %v853_v24 = vsub.f32 %v2008_v56, %v811_v37 }
  0xc3   :  { %v392_v0 = vadd.f32 %v391_v50, %v343_v57  ;;  %v1401_v6 = vpop.eup %1400  ;;  %v871_v43 = vmul.f32 1.442695, %v853_v24  ;;  %v2221_v50 = vperm.slane %v2080_v22, 1 }
  0xc4   :  { %464 = vmatmul.bf16.gmra.mxu2 %v2061_v18  ;;  %v885_v18 = vmul.f32 1.442695, %v860_v59  ;;  %v2191_v8 = vpop.eup %1402  ;;  %v2210_v30 = vpop.f32.mrf.mxu3 }
  0xc5   :  { %1408 = vtanh.f32 %v392_v0  ;;  %647 = vmatmul.f32.gmra.mxu0 %v1401_v6  ;;  %v2198_v3 = vpop.eup %1404  ;;  %v935_v21 = vsel %vm802_vm0, %v2191_v8, 0.0 }
  0xc6   :  { %1410 = vpow2.f32 %v885_v18  ;;  %v2202_v26 = vpop.eup %1406  ;;  %936 = vadd.xlane.f32.xlu1 %v935_v21  ;;  %v923_v48 = vsel %vm802_vm0, %v2198_v3, 0.0 }
  0xc7   :  { %v2189_v63 = vpop.f32.mrf.mxu2  ;;  %1412 = vpow2.f32 %v877_v10  ;;  %v911_v49 = vsel %vm802_vm0, %v2202_v26, 0.0  ;;  %924 = vadd.xlane.f32.xlu2 %v923_v48 }
  0xc8   :  { %v344_v7 = vpop.f32.mrf.mxu0  ;;  %1414 = vpow2.f32 %v869_v20  ;;  %912 = vadd.xlane.f32.xlu0 %v911_v49 }
  0xc9   :  { %v393_v53 = vpop.f32.mrf.mxu1  ;;  %v345_v19 = vadd.f32 %v344_v7, %v2089_v28 }
  0xcb   :  { %v394_v27 = vadd.f32 %v393_v53, %v345_v19  ;;  %v1409_v31 = vpop.eup %1408 }
  0xcc   :  { %v2212_v38 = vpop.eup %1410  ;;  %v486_v62 = vpop.f32.mrf.mxu3 }
  0xcd   :  { %1416 = vtanh.f32 %v394_v27  ;;  %650 = vmatmul.f32.gmra.mxu0 %v1409_v31  ;;  %v2218_v45 = vpop.eup %1412  ;;  %v926_v51 = vsel %vm802_vm0, %v2212_v38, 0.0 }
  0xce   :  { %1418 = vpow2.f32 %v879_v47  ;;  %v2225_v15 = vpop.eup %1414  ;;  %927 = vadd.xlane.f32.xlu1 %v926_v51  ;;  %v914_v56 = vsel %vm802_vm0, %v2218_v45, 0.0 }
  0xcf   :  { %v2208_v25 = vpop.f32.mrf.mxu2  ;;  %1420 = vpow2.f32 %v871_v43  ;;  %v902_v33 = vsel %vm802_vm0, %v2225_v15, 0.0  ;;  %915 = vadd.xlane.f32.xlu2 %v914_v56 }
  0xd0   :  { %v347_v36 = vpop.f32.mrf.mxu0  ;;  %903 = vadd.xlane.f32.xlu0 %v902_v33 }
  0xd1   :  { %v396_v17 = vpop.f32.mrf.mxu1  ;;  %v348_v23 = vadd.f32 %v347_v36, %v2089_v28 }
  0xd3   :  { %v397_v57 = vadd.f32 %v396_v17, %v348_v23  ;;  %v1417_v22 = vpop.eup %1416 }
  0xd4   :  { %v2232_v61 = vpop.eup %1418  ;;  %v489_v20 = vpop.f32.mrf.mxu3 }
  0xd5   :  { %1422 = vtanh.f32 %v397_v57  ;;  %653 = vmatmul.f32.gmra.mxu0 %v1417_v22  ;;  %v2236_v34 = vpop.eup %1420  ;;  %v917_v18 = vsel %vm802_vm0, %v2232_v61, 0.0 }
  0xd6   :  { %1424 = vpow2.f32 %v873_v58  ;;  %918 = vadd.xlane.f32.xlu1 %v917_v18  ;;  %v905_v6 = vsel %vm802_vm0, %v2236_v34, 0.0 }
  0xd7   :  { %v430_v52 = vpop.f32.mrf.mxu2  ;;  %906 = vadd.xlane.f32.xlu2 %v905_v6 }
  0xd8   :  { %v431_v59 = vadd.f32 %v430_v52, %v2221_v50  ;;  %v349_v54 = vpop.f32.mrf.mxu0 }
  0xd9   :  { %v398_v32 = vpop.f32.mrf.mxu1  ;;  %v350_v0 = vadd.f32 %v349_v54, %v2089_v28 }
  0xda   :  { %v480_v5 = vadd.f32 %v2148_v29, %v431_v59 }
  0xdb   :  { %v399_v7 = vadd.f32 %v398_v32, %v350_v0  ;;  %v1423_v53 = vpop.eup %1422 }
  0xdc   :  { %1426 = vtanh.f32 %v480_v5  ;;  %v2243_v14 = vpop.eup %1424  ;;  %v491_v23 = vpop.f32.mrf.mxu3 }
  0xdd   :  { %1428 = vtanh.f32 %v399_v7  ;;  %656 = vmatmul.f32.gmra.mxu0 %v1423_v53  ;;  %v908_v21 = vsel %vm802_vm0, %v2243_v14, 0.0 }
  0xde   :  { %909 = vadd.xlane.f32.xlu1 %v908_v21 }
  0xdf   :  { %v432_v44 = vpop.f32.mrf.mxu2 }
  0xe0   :  { %v433_v29 = vadd.f32 %v432_v44, %v2221_v50  ;;  %v352_v12 = vpop.f32.mrf.mxu0 }
  0xe1   :  { %v401_v19 = vpop.f32.mrf.mxu1  ;;  %v353_v10 = vadd.f32 %v352_v12, %v2089_v28 }
  0xe2   :  { %v1427_v55 = vpop.eup %1426  ;;  %v482_v4 = vadd.f32 %v2185_v2, %v433_v29 }
  0xe3   :  { %1275 = vmatmul.msk.f32.vlgmr.msrb.gmra.mxu1 %vm573_vm1, %v1427_v55  ;;  %v402_v48 = vadd.f32 %v401_v19, %v353_v10  ;;  %v1429_v49 = vpop.eup %1428 }
  0xe4   :  { %1430 = vtanh.f32 %v482_v4  ;;  %v494_v59 = vpop.f32.mrf.mxu3 }
  0xe5   :  { %1432 = vtanh.f32 %v402_v48  ;;  %659 = vmatmul.f32.gmra.mxu0 %v1429_v49 }
  0xe7   :  { %v435_v27 = vpop.f32.mrf.mxu2 }
  0xe8   :  { %v436_v47 = vadd.f32 %v435_v27, %v2221_v50  ;;  %v354_v31 = vpop.f32.mrf.mxu0 }
  0xe9   :  { %v355_v36 = vadd.f32 %v354_v31, %v2089_v28  ;;  %v403_v2 = vpop.f32.mrf.mxu1 }
  0xea   :  { %v1431_v37 = vpop.eup %1430  ;;  %v485_v17 = vadd.f32 %v2210_v30, %v436_v47 }
  0xeb   :  { %v404_v24 = vadd.f32 %v403_v2, %v355_v36  ;;  %1276 = vmatmul.msk.f32.gmra.mxu1 %vm573_vm1, %v1431_v37  ;;  %v1433_v43 = vpop.eup %1432 }
  0xec   :  { %1434 = vtanh.f32 %v485_v17  ;;  %v496_v19 = vpop.f32.mrf.mxu3 }
  0xed   :  { %1436 = vtanh.f32 %v404_v24  ;;  %662 = vmatmul.f32.gmra.mxu0 %v1433_v43 }
  0xef   :  { %v437_v42 = vpop.f32.mrf.mxu2 }
  0xf0   :  { %v438_v51 = vadd.f32 %v437_v42, %v2221_v50  ;;  %v357_v56 = vpop.f32.mrf.mxu0 }
  0xf1   :  { %v358_v57 = vadd.f32 %v357_v56, %v2089_v28 }
  0xf2   :  { %v1435_v33 = vpop.eup %1434  ;;  %v487_v52 = vadd.f32 %v486_v62, %v438_v51 }
  0xf3   :  { %v1437_v58 = vpop.eup %1436  ;;  %v407_v22 = vadd.f32 %v2105_v39, %v358_v57  ;;  %1277 = vmatmul.msk.f32.gmra.mxu1 %vm573_vm1, %v1435_v33 }
  0xf4   :  { %1438 = vtanh.f32 %v487_v52  ;;  %665 = vmatmul.f32.vlgmr.msrb.gmra.mxu3 %v1437_v58 }
  0xf5   :  { %1440 = vtanh.f32 %v407_v22 }
  0xf7   :  { %v440_v30 = vpop.f32.mrf.mxu2 }
  0xf8   :  { %v441_v54 = vadd.f32 %v440_v30, %v2221_v50  ;;  %v359_v32 = vpop.f32.mrf.mxu0 }
  0xf9   :  { %v360_v0 = vadd.f32 %v359_v32, %v2089_v28 }
  0xfa   :  { %v2259_v5 = vpop.xlane.xlu2 %945  ;;  %v1439_v18 = vpop.eup %1438  ;;  %v490_v62 = vadd.f32 %v489_v20, %v441_v54 }
  0xfb   :  { %v1441_v6 = vpop.eup %1440  ;;  %v409_v39 = vadd.f32 %v2121_v60, %v360_v0  ;;  %1278 = vmatmul.msk.f32.gmra.mxu1 %vm573_vm1, %v1439_v18 }
  0xfc   :  { %1442 = vtanh.f32 %v490_v62  ;;  %668 = vmatmul.f32.gmra.mxu3 %v1441_v6 }
  0xfd   :  { %1444 = vtanh.f32 %v409_v39 }
  0xff   :  { %v442_v7 = vpop.f32.mrf.mxu2 }
 0x100   :  { %v443_v44 = vadd.f32 %v442_v7, %v2221_v50  ;;  %v362_v53 = vpop.f32.mrf.mxu0 }
 0x101   :  { %v363_v12 = vadd.f32 %v362_v53, %v2089_v28 }
 0x102   :  { %v805_v29 = vpop.xlane.xlu2 %804  ;;  %v1443_v55 = vpop.eup %1442  ;;  %v492_v4 = vadd.f32 %v491_v23, %v443_v44 }
 0x103   :  { %v851_v10 = vsub.f32 %v2051_v13, %v805_v29  ;;  %v1445_v20 = vpop.eup %1444  ;;  %v412_v60 = vadd.f32 %v2143_v16, %v363_v12  ;;  %1279 = vmatmul.msk.f32.gmra.mxu1 %vm573_vm1, %v1443_v55  ;;  %v499_v16 = vpop.f32.mrf.mxu3 }
 0x104   :  { %1446 = vtanh.f32 %v492_v4  ;;  %671 = vmatmul.f32.gmra.mxu3 %v1445_v20 }
 0x105   :  { %v867_v21 = vmul.f32 1.442695, %v851_v10  ;;  %1448 = vtanh.f32 %v412_v60 }
 0x107   :  { %1450 = vpow2.f32 %v867_v21  ;;  %v445_v48 = vpop.f32.mrf.mxu2 }
 0x108   :  { %v446_v27 = vadd.f32 %v445_v48, %v2221_v50  ;;  %v364_v49 = vpop.f32.mrf.mxu0 }
 0x109   :  { %v365_v47 = vadd.f32 %v364_v49, %v2089_v28 }
 0x10a   :  { %v1447_v31 = vpop.eup %1446  ;;  %v495_v36 = vadd.f32 %v494_v59, %v446_v27 }
 0x10b   :  { %v1449_v2 = vpop.eup %1448  ;;  %v414_v13 = vadd.f32 %v2161_v41, %v365_v47  ;;  %1280 = vmatmul.msk.f32.gmra.mxu1 %vm573_vm1, %v1447_v31  ;;  %v501_v33 = vpop.f32.mrf.mxu3 }
 0x10c   :  { %1452 = vtanh.f32 %v495_v36  ;;  %674 = vmatmul.f32.gmra.mxu3 %v1449_v2 }
 0x10d   :  { %v2273_v37 = vpop.eup %1450  ;;  %1454 = vtanh.f32 %v414_v13 }
 0x10e   :  { %v899_v17 = vsel %vm802_vm0, %v2273_v37, 0.0 }
 0x10f   :  { %900 = vadd.xlane.f32.xlu1 %v899_v17  ;;  %v447_v24 = vpop.f32.mrf.mxu2 }
 0x110   :  { %v448_v23 = vadd.f32 %v447_v24, %v2221_v50  ;;  %v367_v42 = vpop.f32.mrf.mxu0 }
 0x111   :  { %v368_v43 = vadd.f32 %v367_v42, %v2089_v28 }
 0x112   :  { %v1453_v51 = vpop.eup %1452  ;;  %v497_v41 = vadd.f32 %v496_v19, %v448_v23 }
 0x113   :  { %v1455_v56 = vpop.eup %1454  ;;  %v417_v57 = vadd.f32 %v2189_v63, %v368_v43  ;;  %1281 = vmatmul.msk.f32.gmra.mxu1 %vm573_vm1, %v1453_v51  ;;  %v504_v18 = vpop.f32.mrf.mxu3 }
 0x114   :  { %1456 = vtanh.f32 %v497_v41  ;;  %677 = vmatmul.f32.gmra.mxu3 %v1455_v56 }
 0x115   :  { %1458 = vtanh.f32 %v417_v57 }
 0x117   :  { %v450_v52 = vpop.f32.mrf.mxu2 }
 0x118   :  { %v451_v58 = vadd.f32 %v450_v52, %v2221_v50  ;;  %v369_v22 = vpop.f32.mrf.mxu0 }
 0x119   :  { %v370_v30 = vadd.f32 %v369_v22, %v2089_v28 }
 0x11a   :  { %v1457_v59 = vpop.eup %1456  ;;  %v500_v54 = vadd.f32 %v499_v16, %v451_v58 }
 0x11b   :  { %v1459_v32 = vpop.eup %1458  ;;  %v419_v0 = vadd.f32 %v2208_v25, %v370_v30  ;;  %1282 = vmatmul.msk.f32.gmra.mxu1 %vm573_vm1, %v1457_v59  ;;  %v506_v25 = vpop.f32.mrf.mxu3 }
 0x11c   :  { %1460 = vtanh.f32 %v500_v54  ;;  %680 = vmatmul.f32.gmra.mxu3 %v1459_v32 }
 0x11d   :  { %1462 = vtanh.f32 %v419_v0 }
 0x11f   :  { %v452_v63 = vpop.f32.mrf.mxu2 }
 0x120   :  { %v453_v62 = vadd.f32 %v452_v63, %v2221_v50 }
 0x122   :  { %v1461_v6 = vpop.eup %1460  ;;  %v502_v39 = vadd.f32 %v501_v33, %v453_v62  ;;  %v2303_v33 = vstv %s2405_s5  ;;  %s1569_s5 = smov [#allocation4]  }
 0x123   :  { %v1463_v7 = vpop.eup %1462  ;;  %1283 = vmatmul.msk.f32.gmra.mxu1 %vm573_vm1, %v1461_v6  ;;  %v509_v10 = vpop.f32.mrf.mxu3  ;;  %s1072_s20 = sshll.u32 %s1569_s5, 4  ;;  %s1073_s20 = int_to_ptr.vmem [resolvable:$true] %s1072_s20 }
 0x124   :  { %1464 = vtanh.f32 %v502_v39  ;;  %683 = vmatmul.f32.gmra.mxu3 %v1463_v7 }
 0x127   :  { %v455_v28 = vpop.f32.mrf.mxu2 }
 0x128   :  { %v456_v44 = vadd.f32 %v455_v28, %v2221_v50 }
 0x129   :  { %v639_v57 = vpop.f32.mrf.mxu0 }
 0x12a   :  { %v1465_v53 = vpop.eup %1464  ;;  %v505_v29 = vadd.f32 %v504_v18, %v456_v44  ;;  %v640_v52 = vadd.f32 %v639_v57, %v2303_v33  ;;  %v940_v57 = vpop.xlane.xlu0 %939 }
 0x12b   :  { %1284 = vmatmul.msk.f32.gmra.mxu1 %vm573_vm1, %v1465_v53  ;;  %v511_v27 = vpop.f32.mrf.mxu3 }
 0x12c   :  { %1466 = vtanh.f32 %v505_v29 }
 0x12f   :  { %v457_v12 = vpop.f32.mrf.mxu2 }
 0x130   :  { %v458_v19 = vadd.f32 %v457_v12, %v2221_v50 }
 0x132   :  { %v1467_v55 = vpop.eup %1466  ;;  %v507_v4 = vadd.f32 %v506_v25, %v458_v19 }
 0x133   :  { %1285 = vmatmul.msk.f32.gmra.mxu1 %vm573_vm1, %v1467_v55  ;;  %v514_v2 = vpop.f32.mrf.mxu3 }
 0x134   :  { %1468 = vtanh.f32 %v507_v4 }
 0x137   :  { %v460_v20 = vpop.f32.mrf.mxu2 }
 0x138   :  { %v461_v60 = vadd.f32 %v460_v20, %v2221_v50 }
 0x13a   :  { %v1469_v21 = vpop.eup %1468  ;;  %v510_v48 = vadd.f32 %v509_v10, %v461_v60 }
 0x13b   :  { %1286 = vmatmul.msk.f32.gmra.mxu1 %vm573_vm1, %v1469_v21  ;;  %v516_v43 = vpop.f32.mrf.mxu3 }
 0x13c   :  { %1470 = vtanh.f32 %v510_v48 }
 0x13f   :  { %v462_v49 = vpop.f32.mrf.mxu2 }
 0x140   :  { %v463_v47 = vadd.f32 %v462_v49, %v2221_v50 }
 0x142   :  { %v1471_v31 = vpop.eup %1470  ;;  %v512_v36 = vadd.f32 %v511_v27, %v463_v47 }
 0x143   :  { %1287 = vmatmul.msk.f32.gmra.mxu1 %vm573_vm1, %v1471_v31 }
 0x144   :  { %1472 = vtanh.f32 %v512_v36 }
 0x147   :  { %v465_v13 = vpop.f32.mrf.mxu2 }
 0x148   :  { %v466_v16 = vadd.f32 %v465_v13, %v2221_v50 }
 0x14a   :  { %v1473_v17 = vpop.eup %1472  ;;  %v515_v24 = vadd.f32 %v514_v2, %v466_v16 }
 0x14b   :  { %1288 = vmatmul.msk.f32.gmra.mxu1 %vm573_vm1, %v1473_v17  ;;  %v943_v17 = vpop.xlane.xlu1 %942 }
 0x14c   :  { %1474 = vtanh.f32 %v515_v24 }
 0x14f   :  { %v467_v23 = vpop.f32.mrf.mxu2 }
 0x150   :  { %v468_v42 = vadd.f32 %v467_v23, %v2221_v50  ;;  %v642_v50 = vpop.f32.mrf.mxu0 }
 0x151   :  { %v643_v30 = vadd.f32 %v642_v50, %v2303_v33 }
 0x152   :  { %v1475_v51 = vpop.eup %1474  ;;  %v517_v41 = vadd.f32 %v516_v43, %v468_v42 }
 0x153   :  { %1289 = vmatmul.msk.f32.gmra.mxu1 %vm573_vm1, %v1475_v51 }
 0x154   :  { %1476 = vtanh.f32 %v517_v41 }
 0x155   :  { %1478 = vrcp.f32 %v2259_v5 }
 0x156   :  { %1480 = vrcp.f32 %v943_v17 }
 0x158   :  { %v645_v32 = vpop.f32.mrf.mxu0 }
 0x159   :  { %v646_v0 = vadd.f32 %v645_v32, %v2303_v33 }
 0x15a   :  { %v1477_v56 = vpop.eup %1476 }
 0x15b   :  { %1290 = vmatmul.msk.f32.gmra.mxu1 %vm573_vm1, %v1477_v56  ;;  %v1479_v41 = vpop.eup %1478 }
 0x160   :  { %v704_v58 = vpop.f32.mrf.mxu1  ;;  %v2329_v60 = vpop.f32.mrf.mxu0 }
 0x161   :  { %v2306_v22 = vadd.f32 %v704_v58, %v640_v52  ;;  %v1481_v52 = vpop.eup %1480  ;;  %v978_v58 = vmul.f32 %v1479_v41, %v2043_v11 }
 0x168   :  { %v707_v59 = vpop.f32.mrf.mxu1  ;;  %v2331_v27 = vpop.f32.mrf.mxu0 }
 0x169   :  { %v2309_v54 = vadd.f32 %v707_v59, %v643_v30  ;;  %v937_v59 = vpop.xlane.xlu1 %936 }
 0x170   :  { %v710_v63 = vpop.f32.mrf.mxu1  ;;  %v2333_v31 = vpop.f32.mrf.mxu0 }
 0x171   :  { %v2312_v18 = vadd.f32 %v710_v63, %v646_v0 }
 0x177   :  { %v666_v28 = vpop.f32.mrf.mxu3 }
 0x178   :  { %v2314_v62 = vpop.f32.mrf.mxu1  ;;  %v667_v29 = vadd.f32 %v666_v28, %v2303_v33  ;;  %v2338_v43 = vpop.f32.mrf.mxu0  ;;  %v977_v28 = vmul.f32 %v1481_v52, %v2159_v40 }
 0x179   :  { %v931_v40 = vpop.xlane.xlu0 %930 }
 0x17f   :  { %v669_v53 = vpop.f32.mrf.mxu3 }
 0x180   :  { %v2316_v6 = vpop.f32.mrf.mxu1 }
 0x187   :  { %v672_v55 = vpop.f32.mrf.mxu3 }
 0x188   :  { %v2318_v39 = vpop.f32.mrf.mxu1  ;;  %v673_v63 = vadd.f32 %v672_v55, %v2303_v33 }
 0x18f   :  { %v675_v10 = vpop.f32.mrf.mxu3 }
 0x190   :  { %v2320_v7 = vpop.f32.mrf.mxu1  ;;  %v676_v5 = vadd.f32 %v675_v10, %v2303_v33  ;;  %v934_v10 = vpop.xlane.xlu2 %933 }
 0x197   :  { %v678_v21 = vpop.f32.mrf.mxu3 }
 0x198   :  { %v2322_v44 = vpop.f32.mrf.mxu1  ;;  %v679_v51 = vadd.f32 %v678_v21, %v2303_v33 }
 0x19f   :  { %v681_v47 = vpop.f32.mrf.mxu3 }
 0x1a0   :  { %v2324_v25 = vpop.f32.mrf.mxu1  ;;  %v682_v13 = vadd.f32 %v681_v47, %v2303_v33 }
 0x1a7   :  { %v684_v2 = vpop.f32.mrf.mxu3 }
 0x1a8   :  { %v731_v12 = vpop.f32.mrf.mxu1  ;;  %v685_v16 = vadd.f32 %v684_v2, %v2303_v33 }
 0x1a9   :  { %v2327_v19 = vadd.f32 %v731_v12, %v667_v29  ;;  %v660_v29 = vpop.f32.mrf.mxu0 }
 0x1b0   :  { %v734_v4 = vpop.f32.mrf.mxu1 }
 0x1b8   :  { %v737_v20 = vpop.f32.mrf.mxu1 }
 0x1b9   :  { %v738_v21 = vadd.f32 %v737_v20, %v673_v63 }
 0x1c0   :  { %v740_v48 = vpop.f32.mrf.mxu1 }
 0x1c1   :  { %v741_v30 = vadd.f32 %v740_v48, %v676_v5  ;;  %v670_v48 = vadd.f32 %v669_v53, %v2303_v33 }
 0x1c3   :  { %v735_v55 = vadd.f32 %v734_v4, %v670_v48 }
 0x1c8   :  { %v743_v49 = vpop.f32.mrf.mxu1 }
 0x1c9   :  { %v744_v56 = vadd.f32 %v743_v49, %v679_v51  ;;  %v925_v51 = vpop.xlane.xlu2 %924 }
 0x1d0   :  { %v746_v36 = vpop.f32.mrf.mxu1 }
 0x1d1   :  { %v747_v23 = vadd.f32 %v746_v36, %v682_v13 }
 0x1d8   :  { %v749_v24 = vpop.f32.mrf.mxu1 }
 0x1d9   :  { %v750_v42 = vadd.f32 %v749_v24, %v685_v16  ;;  %v663_v16 = vpop.f32.mrf.mxu0  ;;  %v928_v24 = vpop.xlane.xlu1 %927 }
 0x1db   :  { %1482 = vtanh.f32 %v750_v42 }
 0x1dc   :  { %1484 = vtanh.f32 %v747_v23 }
 0x1dd   :  { %1486 = vrcp.f32 %v940_v57  ;;  %v661_v57 = vadd.f32 %v660_v29, %v2303_v33 }
 0x1de   :  { %1488 = vtanh.f32 %v744_v56 }
 0x1df   :  { %1490 = vrcp.f32 %v937_v59 }
 0x1e0   :  { %1492 = vtanh.f32 %v741_v30 }
 0x1e1   :  { %v1483_v50 = vpop.eup %1482  ;;  %1494 = vrcp.f32 %v934_v10 }
 0x1e2   :  { %v994_v32 = vmul.f32 %v1483_v50, %v978_v58  ;;  %v1485_v0 = vpop.eup %1484  ;;  %1496 = vtanh.f32 %v738_v21  ;;  %v922_v58 = vpop.xlane.xlu0 %921 }
 0x1e3   :  { %v1487_v12 = vpop.eup %1486  ;;  %v993_v49 = vmul.f32 %v1485_v0, %v977_v28  ;;  %1498 = vrcp.f32 %v931_v40  ;;  %v916_v28 = vpop.xlane.xlu2 %915 }
 0x1e4   :  { %1291 = vmatpush.xpose.msk.msra.mxu2 %vm802_vm0, %v994_v32  ;;  %v1489_v11 = vpop.eup %1488  ;;  %v976_v47 = vmul.f32 %v1487_v12, %v2136_v9  ;;  %1500 = vtanh.f32 %v735_v55  ;;  %v664_v9 = vadd.f32 %v663_v16, %v2303_v33 }
 0x1e5   :  { %v1491_v36 = vpop.eup %1490  ;;  %1502 = vrcp.f32 %v928_v24 }
 0x1e6   :  { %v992_v2 = vmul.f32 %v1489_v11, %v976_v47  ;;  %v1493_v13 = vpop.eup %1492  ;;  %v975_v20 = vmul.f32 %v1491_v36, %v2191_v8  ;;  %v729_v41 = vadd.f32 %v2324_v25, %v664_v9  ;;  %1504 = vtanh.f32 %v2327_v19  ;;  %v919_v25 = vpop.xlane.xlu1 %918 }
 0x1e7   :  { %v1495_v17 = vpop.eup %1494  ;;  %1506 = vrcp.f32 %v925_v51  ;;  %v658_v19 = vadd.f32 %v2338_v43, %v2303_v33  ;;  %v649_v47 = vadd.f32 %v2329_v60, %v2303_v33 }
 0x1e8   :  { %1292 = vmatpush.xpose.msk.msra.mxu2 %vm802_vm0, %v993_v49  ;;  %v991_v53 = vmul.f32 %v1493_v13, %v975_v20  ;;  %v1497_v23 = vpop.eup %1496  ;;  %v974_v4 = vmul.f32 %v1495_v17, %v2166_v46  ;;  %v726_v46 = vadd.f32 %v2322_v44, %v661_v57  ;;  %1508 = vtanh.f32 %v729_v41 }
 0x1e9   :  { %v1499_v42 = vpop.eup %1498  ;;  %1510 = vrcp.f32 %v922_v58  ;;  %v655_v44 = vadd.f32 %v2333_v31, %v2303_v33  ;;  %v714_v55 = vadd.f32 %v2314_v62, %v649_v47 }
 0x1ea   :  { %v990_v8 = vmul.f32 %v1497_v23, %v974_v4  ;;  %v1501_v56 = vpop.eup %1500  ;;  %v973_v5 = vmul.f32 %v1499_v42, %v2152_v35  ;;  %v723_v35 = vadd.f32 %v2320_v7, %v658_v19  ;;  %1512 = vtanh.f32 %v726_v46  ;;  %v913_v10 = vpop.xlane.xlu0 %912 }
 0x1eb   :  { %v1503_v52 = vpop.eup %1502  ;;  %1514 = vrcp.f32 %v919_v25  ;;  %v652_v7 = vadd.f32 %v2331_v27, %v2303_v33 }
 0x1ec   :  { %1293 = vmatpush.xpose.msk.msra.mxu2 %vm802_vm0, %v992_v2  ;;  %v989_v50 = vmul.f32 %v1501_v56, %v973_v5  ;;  %v1505_v30 = vpop.eup %1504  ;;  %v972_v59 = vmul.f32 %v1503_v52, %v2212_v38  ;;  %v720_v38 = vadd.f32 %v2318_v39, %v655_v44  ;;  %1516 = vtanh.f32 %v723_v35 }
 0x1ed   :  { %v1507_v32 = vpop.eup %1506  ;;  %1518 = vrcp.f32 %v916_v28  ;;  %v717_v11 = vadd.f32 %v2316_v6, %v652_v7  ;;  %v1568_v56 = vmov 1.0  }
 0x1ee   :  { %v988_v0 = vmul.f32 %v1505_v30, %v972_v59  ;;  %v1509_v63 = vpop.eup %1508  ;;  %v971_v29 = vmul.f32 %v1507_v32, %v2198_v3  ;;  %1520 = vrcp.f32 %v913_v10  ;;  %v910_v3 = vpop.xlane.xlu1 %909 }
 0x1ef   :  { %v1511_v43 = vpop.eup %1510  ;;  %1522 = vtanh.f32 %v720_v38 }
 0x1f0   :  { %1294 = vmatpush.xpose.msk.msra.mxu2 %vm802_vm0, %v991_v53  ;;  %v987_v12 = vmul.f32 %v1509_v63, %v971_v29  ;;  %v1513_v21 = vpop.eup %1512  ;;  %v970_v49 = vmul.f32 %v1511_v43, %v2183_v1  ;;  %1524 = vrcp.f32 %v910_v3  ;;  %v907_v1 = vpop.xlane.xlu2 %906 }
 0x1f1   :  { %v1515_v31 = vpop.eup %1514  ;;  %1526 = vtanh.f32 %v717_v11 }
 0x1f2   :  { %v986_v48 = vmul.f32 %v1513_v21, %v970_v49  ;;  %v1517_v39 = vpop.eup %1516  ;;  %v969_v36 = vmul.f32 %v1515_v31, %v2232_v61  ;;  %1528 = vrcp.f32 %v907_v1  ;;  %v904_v20 = vpop.xlane.xlu0 %903 }
 0x1f3   :  { %v1519_v27 = vpop.eup %1518  ;;  %1530 = vtanh.f32 %v714_v55 }
 0x1f4   :  { %1295 = vmatpush.xpose.msk.msra.mxu2 %vm802_vm0, %v990_v8  ;;  %v1521_v40 = vpop.eup %1520  ;;  %v985_v2 = vmul.f32 %v1517_v39, %v969_v36  ;;  %v968_v6 = vmul.f32 %v1519_v27, %v2218_v45  ;;  %1532 = vrcp.f32 %v904_v20 }
 0x1f5   :  { %v1523_v13 = vpop.eup %1522  ;;  %v967_v61 = vmul.f32 %v1521_v40, %v2202_v26  ;;  %1534 = vtanh.f32 %v2312_v18 }
 0x1f6   :  { %v1525_v33 = vpop.eup %1524  ;;  %v984_v60 = vmul.f32 %v1523_v13, %v968_v6  ;;  %v901_v24 = vpop.xlane.xlu1 %900  ;;  %1536 = vtanh.f32 %v2309_v54 }
 0x1f7   :  { %v1527_v16 = vpop.eup %1526  ;;  %v966_v17 = vmul.f32 %v1525_v33, %v2243_v14  ;;  %1538 = vrcp.f32 %v901_v24 }
 0x1f8   :  { %1296 = vmatpush.xpose.msk.msra.mxu2 %vm802_vm0, %v989_v50  ;;  %v1529_v62 = vpop.eup %1528  ;;  %v983_v45 = vmul.f32 %v1527_v16, %v967_v61  ;;  %1540 = vtanh.f32 %v2306_v22 }
 0x1f9   :  { %v1531_v53 = vpop.eup %1530  ;;  %v965_v26 = vmul.f32 %v1529_v62, %v2236_v34 }
 0x1fa   :  { %v1533_v23 = vpop.eup %1532  ;;  %v982_v9 = vmul.f32 %v1531_v53, %v966_v17 }
 0x1fb   :  { %v1535_v4 = vpop.eup %1534  ;;  %v964_v18 = vmul.f32 %v1533_v23, %v2225_v15 }
 0x1fc   :  { %1297 = vmatpush.xpose.msk.msra.mxu2 %vm802_vm0, %v988_v0  ;;  %v1537_v42 = vpop.eup %1536  ;;  %v981_v51 = vmul.f32 %v1535_v4, %v965_v26 }
 0x1fd   :  { %v1539_v14 = vpop.eup %1538  ;;  %v980_v41 = vmul.f32 %v1537_v42, %v964_v18 }
 0x1fe   :  { %v963_v54 = vmul.f32 %v1539_v14, %v2273_v37  ;;  %v1541_v8 = vpop.eup %1540 }
 0x200   :  { %1298 = vmatpush.xpose.msk.msra.mxu2 %vm802_vm0, %v987_v12  ;;  %v979_v34 = vmul.f32 %v1541_v8, %v963_v54 }
 0x204   :  { %1299 = vmatpush.xpose.msk.msra.mxu2 %vm802_vm0, %v986_v48 }
 0x208   :  { %1300 = vmatpush.xpose.msk.msra.mxu2 %vm802_vm0, %v985_v2 }
 0x20c   :  { %1301 = vmatpush.xpose.msk.msra.mxu2 %vm802_vm0, %v984_v60 }
 0x210   :  { %1302 = vmatpush.xpose.msk.msra.mxu2 %vm802_vm0, %v983_v45 }
 0x214   :  { %1303 = vmatpush.xpose.msk.msra.mxu2 %vm802_vm0, %v982_v9 }
 0x218   :  { %1304 = vmatpush.xpose.msk.msra.mxu2 %vm802_vm0, %v981_v51 }
 0x21c   :  { %1305 = vmatpush.xpose.msk.msra.mxu2 %vm802_vm0, %v980_v41 }
 0x220   :  { %1306 = vmatpush.xpose.msk.msra.mxu2 %vm802_vm0, %v979_v34 }
 0x223   :  { %1307 = vmatmul.msk.f32.vlgmr.msra.gmra.mxu2 %vm802_vm0, %v1568_v56 }
 0x2a6   :  { %v1063_v15 = vpop.f32.mrf.mxu2 }
 0x2a7   :  { %1066 = vst [vmem:[#allocation4] sm:$0x1] %v1063_v15 }
 0x2a8   :  { %1077 = dma.vmem_to_hbm [thread:$0]  %s1073_s20, 16, %s1075_s22, [#allocation5]  }
 0x2a9   :  { %1566 = dma.done.wait [#allocation5], 16  }
 0x2aa   :  { %1567 = vsyncadd [#allocation5], 4294967280 }
 0x2ab   :  { %1082 = vsyncpa [#allocation5], 1 }

</bundles_post_ra>
